<compile_context>
chip_gen: v5e
topology: v5e:2x2
jax: 0.10.0
libtpu: 0.0.40
codegen_flags: <defaults>
</compile_context>

<pallas_src>
import functools
from typing import NamedTuple

import jax
import jax.numpy as jnp
from jax.experimental import pallas as pl
from jax.experimental.pallas import tpu as pltpu


def _round_up(x: int, m: int) -> int:
    return (x + m - 1) // m * m


# ---------------------------------------------------------------------------
# Kernels
# ---------------------------------------------------------------------------

def _linear_single_block_kernel(x_ref, w_ref, b_ref, o_ref):
    # Whole (padded) problem resident in VMEM: one MXU dot + bias add.
    o_ref[...] = (
        jnp.dot(x_ref[...], w_ref[...], preferred_element_type=jnp.float32)
        + b_ref[...].astype(jnp.float32)
    ).astype(o_ref.dtype)


def _linear_tiled_kernel(x_ref, w_ref, b_ref, o_ref):
    # x_ref: [tm, tk]  activation block
    # w_ref: [tk, tn]  weight block, pre-transposed at pack time (no in-kernel
    #                  relayout; standard (1,)x(0,) MXU contraction)
    # b_ref: [1,  tn]  bias block
    # o_ref: [tm, tn]  f32 output tile, resident across the K grid axis;
    #                  doubles as the accumulator (no VMEM scratch, no epilogue)
    k = pl.program_id(2)

    @pl.when(k == 0)
    def _():
        o_ref[...] = jnp.broadcast_to(b_ref[...].astype(o_ref.dtype), o_ref.shape)

    o_ref[...] += jnp.dot(
        x_ref[...], w_ref[...], preferred_element_type=jnp.float32
    ).astype(o_ref.dtype)


# ---------------------------------------------------------------------------
# One-time parameter packing (init-time, off the hot path)
# ---------------------------------------------------------------------------

class PackedLinear(NamedTuple):
    w_t: jax.Array   # [D_in_p, D_out_p] padded + pre-transposed (f32 or bf16)
    b: jax.Array     # [1, D_out_p] f32
    d_in: int
    d_out: int
    tn: int
    tk: int


def pack_linear_params(weight, bias, *, tn=512, tk=1024, use_bf16=False):
    """Pad to lane/tile multiples and pre-transpose W -> [D_in, D_out], once."""
    d_out, d_in = weight.shape
    tn = min(tn, _round_up(d_out, 128))
    tk = min(tk, _round_up(d_in, 128))
    d_out_p = _round_up(d_out, tn)
    d_in_p = _round_up(d_in, tk)
    w = jnp.pad(weight.astype(jnp.float32),
                ((0, d_out_p - d_out), (0, d_in_p - d_in)))
    w_t = jnp.asarray(w.T)                       # [D_in_p, D_out_p]
    if use_bf16:
        w_t = w_t.astype(jnp.bfloat16)
    b = jnp.pad(bias.astype(jnp.float32), (0, d_out_p - d_out)).reshape(1, d_out_p)
    return PackedLinear(w_t=w_t, b=b, d_in=d_in, d_out=d_out, tn=tn, tk=tk)


# ---------------------------------------------------------------------------
# Forward (hot path): pad activations only, dispatch fast / tiled kernel
# ---------------------------------------------------------------------------

@functools.partial(jax.jit, static_argnames=("d_out", "tm", "tn", "tk", "use_bf16"))
def _linear_forward(x, w_t, b, *, d_out, tm, tn, tk, use_bf16):
    n, d_in = x.shape
    d_in_p, d_out_p = w_t.shape

    tm = min(tm, _round_up(n, 8))
    n_p = _round_up(n, tm)

    # Zero-pad activations (K-axis zero padding is exact for the contraction).
    x_p = jnp.pad(x.astype(jnp.float32), ((0, n_p - n), (0, d_in_p - d_in)))
    if use_bf16:
        x_p = x_p.astype(jnp.bfloat16)

    in_itemsize = 2 if use_bf16 else 4
    flops = 2 * n_p * d_in_p * d_out_p
    bytes_accessed = ((n_p * d_in_p + d_in_p * d_out_p) * in_itemsize
                      + (d_out_p + n_p * d_out_p) * 4)
    cost = pl.CostEstimate(flops=flops, transcendentals=0,
                           bytes_accessed=bytes_accessed)

    grid = (n_p // tm, d_out_p // tn, d_in_p // tk)

    if grid == (1, 1, 1):
        # Single-block fast path: no grid, no pl.when, no accumulator carry.
        out = pl.pallas_call(
            _linear_single_block_kernel,
            out_shape=jax.ShapeDtypeStruct((n_p, d_out_p), jnp.float32),
            in_specs=[
                pl.BlockSpec(memory_space=pltpu.MemorySpace.VMEM),
                pl.BlockSpec(memory_space=pltpu.MemorySpace.VMEM),
                pl.BlockSpec(memory_space=pltpu.MemorySpace.VMEM),
            ],
            out_specs=pl.BlockSpec(memory_space=pltpu.MemorySpace.VMEM),
            cost_estimate=cost,
        )(x_p, w_t, b)
        return out[:n, :d_out]

    # VMEM budget: double-buffered x/w/bias blocks + resident f32 output tile.
    vmem_needed = 2 * (tm * tk + tk * tn + tn) * in_itemsize + tm * tn * 4
    vmem_limit = min(max(2 * vmem_needed + (4 << 20), 32 << 20), 64 << 20)

    # Grid: (i over N, j over D_out) parallel (megacore / v7x 2-TC sharding),
    # reduction axis k last and "arbitrary" so the output tile carries across it.
    out = pl.pallas_call(
        _linear_tiled_kernel,
        out_shape=jax.ShapeDtypeStruct((n_p, d_out_p), jnp.float32),
        grid_spec=pltpu.PrefetchScalarGridSpec(
            num_scalar_prefetch=0,
            grid=grid,
            in_specs=[
                pl.BlockSpec((tm, tk), lambda i, j, k: (i, k)),
                pl.BlockSpec((tk, tn), lambda i, j, k: (k, j)),
                pl.BlockSpec((1, tn), lambda i, j, k: (0, j)),
            ],
            out_specs=pl.BlockSpec((tm, tn), lambda i, j, k: (i, j)),
        ),
        compiler_params=pltpu.CompilerParams(
            dimension_semantics=("parallel", "parallel", "arbitrary"),
            vmem_limit_bytes=vmem_limit,
        ),
        cost_estimate=cost,
    )(x_p, w_t, b)
    return out[:n, :d_out]


class PrototypicalHeadPallas:
    """Inference-time PrototypicalHead.forward: embeddings = linear(dropout(x)).

    nn.Dropout is identity at eval time, so forward == x @ W^T + b.
    Parameters are packed (padded, pre-transposed, optionally bf16) ONCE here.
    """

    def __init__(self, weight, bias, *, tm=512, tn=512, tk=1024, use_bf16=False):
        # TODO(synk): training-mode dropout would need pltpu.prng_seed +
        # pltpu.prng_random_bits masking with 1/(1-p) scaling inside the kernel.
        self.tm = tm
        self.use_bf16 = use_bf16
        self.params = pack_linear_params(weight, bias, tn=tn, tk=tk,
                                         use_bf16=use_bf16)

    def __call__(self, body_output):
        p = self.params
        return _linear_forward(
            body_output, p.w_t, p.b,
            d_out=p.d_out, tm=self.tm, tn=p.tn, tk=p.tk, use_bf16=self.use_bf16)


if __name__ == "__main__":
    # ---- module-config shapes (hits the single-block fast path) ----
    input_size = 32     # D_in
    output_size = 16    # D_out (embedding size)
    batch = 8           # N samples

    key = jax.random.PRNGKey(0)
    kx, kw, kb = jax.random.split(key, 3)
    bound = 1.0 / (input_size ** 0.5)
    weight = jax.random.uniform(kw, (output_size, input_size), jnp.float32,
                                -bound, bound)
    bias = jax.random.uniform(kb, (output_size,), jnp.float32, -bound, bound)
    body_output = jax.random.normal(kx, (batch, input_size), jnp.float32)

    head = PrototypicalHeadPallas(weight, bias)
    embeddings = jax.block_until_ready(head(body_output))
    ref = body_output @ weight.T + bias
    assert embeddings.shape == (batch, output_size)
    assert jnp.allclose(embeddings, ref, atol=1e-5, rtol=1e-5)

    # ---- larger shapes with small forced tiles to exercise the tiled path ----
    n2, d_in2, d_out2 = 384, 512, 256
    k2x, k2w, k2b = jax.random.split(jax.random.PRNGKey(1), 3)
    bound2 = 1.0 / (d_in2 ** 0.5)
    w2 = jax.random.uniform(k2w, (d_out2, d_in2), jnp.float32, -bound2, bound2)
    b2 = jax.random.uniform(k2b, (d_out2,), jnp.float32, -bound2, bound2)
    x2 = jax.random.normal(k2x, (n2, d_in2), jnp.float32)
    ref2 = x2 @ w2.T + b2

    head2 = PrototypicalHeadPallas(w2, b2, tm=128, tn=128, tk=256)  # grid (3,2,2)
    emb2 = jax.block_until_ready(head2(x2))
    assert jnp.allclose(emb2, ref2, atol=1e-4, rtol=1e-4)

    # ---- optional bf16 fast path (f32 accumulation), looser tolerance ----
    head2_bf16 = PrototypicalHeadPallas(w2, b2, tm=128, tn=128, tk=256,
                                        use_bf16=True)
    emb2_bf16 = jax.block_until_ready(head2_bf16(x2))
    assert jnp.allclose(emb2_bf16, ref2, atol=5e-2, rtol=5e-2)

    print("KERNEL_OK")
</pallas_src>

<mosaic_0001>
module attributes {stable_mosaic.version = 11 : i64} {
  func.func @_linear_single_block_kernel(%arg0: memref<8x128xf32, #tpu.memory_space<vmem>>, %arg1: memref<128x128xf32, #tpu.memory_space<vmem>>, %arg2: memref<1x128xf32, #tpu.memory_space<vmem>>, %arg3: memref<8x128xf32, #tpu.memory_space<vmem>>) attributes {dimension_semantics = [], scalar_prefetch = 0 : i64, scratch_operands = 0 : i64, tpu.core_type = #tpu.core_type<tc>} {
    %c0 = arith.constant 0 : index
    %c0_0 = arith.constant 0 : index
    %0 = vector.load %arg0[%c0, %c0_0] : memref<8x128xf32, #tpu.memory_space<vmem>>, vector<8x128xf32>
    %c0_1 = arith.constant 0 : index
    %c0_2 = arith.constant 0 : index
    %1 = vector.load %arg1[%c0_1, %c0_2] : memref<128x128xf32, #tpu.memory_space<vmem>>, vector<128x128xf32>
    %cst = arith.constant dense<0.000000e+00> : vector<8x128xf32>
    %2 = tpu.matmul %0, %1, %cst {dimension_numbers = #tpu.dot_dimension_numbers<[1], [0], [0], [1], [0, 0, 1, 1], [], []>} : vector<8x128xf32>, vector<128x128xf32>, vector<8x128xf32> -> vector<8x128xf32>
    %c0_3 = arith.constant 0 : index
    %c0_4 = arith.constant 0 : index
    %3 = vector.load %arg2[%c0_3, %c0_4] : memref<1x128xf32, #tpu.memory_space<vmem>>, vector<1x128xf32>
    %4 = vector.broadcast %3 : vector<1x128xf32> to vector<8x128xf32>
    %5 = arith.addf %2, %4 : vector<8x128xf32>
    %c0_5 = arith.constant 0 : index
    %c0_6 = arith.constant 0 : index
    %6 = vector.load %arg3[%c0_5, %c0_6] : memref<8x128xf32, #tpu.memory_space<vmem>>, vector<8x128xf32>
    tpu.vector_store %arg3[%c0_5, %c0_6], %5 {strides = array<i32>} : memref<8x128xf32, #tpu.memory_space<vmem>>, vector<8x128xf32>,
    return
  }
}

</mosaic_0001>

<bundles_post_ra>
// kernel: _linear_forward.1
= control target key start
LH: loop header
LB: loop body
LE: loop exit
PB: predicated region body
PF: predicated region fallthrough
CT: control target
= control target key end

     0   :  { %8 = vsyncpa [#allocation3], 0  ;;  %s183_s0 = inlined_call_operand.vmem [shape: f32[8,128], index: 0, kind: input, shape index: {}]   ;;  %s184_s1 = inlined_call_operand.hbm [shape: f32[128,128], index: 1, kind: input, shape index: {}]   ;;  %s185_s2 = inlined_call_operand.vmem [shape: f32[1,128], index: 2, kind: input, shape index: {}]   ;;  %s186_s3 = inlined_call_operand.hbm [shape: f32[8,128], index: 3, kind: output, shape index: {}]  }
   0x1   :  { %9 = vsyncpa [#allocation4], 0  ;;  %s16_s14 = sshll.u32 %s184_s1, 4  ;;  %s147_s15 = smov [#allocation2]   ;;  %s17_s14 = int_to_ptr.hbm [resolvable:$true] %s16_s14 }
   0x2   :  { %s18_s16 = sshll.u32 %s147_s15, 4  ;;  %s148_s17 = smov 128   ;;  %s19_s16 = int_to_ptr.vmem [resolvable:$true] %s18_s16 }
   0x3   :  { %s149_s18 = smov 8  }
   0x4   :  { %24 = dma.hbm_to_vmem [thread:$0]  %s17_s14, 2048, %s19_s16, [#allocation3], %s148_s17, %s148_s17, %s149_s18  }
   0x5   :  { %143 = dma.done.wait [#allocation3], 2048  }
   0x6   :  { %144 = vsyncadd [#allocation3], 4294965248  ;;  %v47_v0 = vld [vmem:[#allocation2 + $0x78] sm:$0xff]  ;;  %v46_v1 = vld [vmem:[#allocation2 + $0x70] sm:$0xff]  ;;  %s150_s22 = smov [#allocation5]   ;;  %s80_s26 = sshll.u32 %s186_s3, 4  ;;  %s81_s26 = int_to_ptr.hbm [resolvable:$true] %s80_s26 }
   0x7   :  { %52 = vmatpush.msra.mxu0 %v47_v0  ;;  %v45_v2 = vld [vmem:[#allocation2 + $0x68] sm:$0xff]  ;;  %v44_v3 = vld [vmem:[#allocation2 + $0x60] sm:$0xff]  ;;  %v43_v4 = vld [vmem:[#allocation2 + $0x58] sm:$0xff]  ;;  %s78_s23 = sshll.u32 %s150_s22, 4  ;;  %s79_s23 = int_to_ptr.vmem [resolvable:$true] %s78_s23 }
   0x8   :  { %v42_v5 = vld [vmem:[#allocation2 + $0x50] sm:$0xff]  ;;  %v41_v6 = vld [vmem:[#allocation2 + $0x48] sm:$0xff]  ;;  %v40_v7 = vld [vmem:[#allocation2 + $0x40] sm:$0xff] }
   0x9   :  { %53 = vmatpush.msra.mxu0 %v46_v1  ;;  %v39_v8 = vld [vmem:[#allocation2 + $0x38] sm:$0xff]  ;;  %v38_v9 = vld [vmem:[#allocation2 + $0x30] sm:$0xff]  ;;  %v37_v10 = vld [vmem:[#allocation2 + $0x28] sm:$0xff] }
   0xa   :  { %v36_v11 = vld [vmem:[#allocation2 + $0x20] sm:$0xff]  ;;  %v35_v12 = vld [vmem:[#allocation2 + $0x18] sm:$0xff]  ;;  %v34_v13 = vld [vmem:[#allocation2 + $0x10] sm:$0xff] }
   0xb   :  { %54 = vmatpush.msra.mxu0 %v45_v2  ;;  %v33_v14 = vld [vmem:[#allocation2 + $0x8] sm:$0xff]  ;;  %v32_v15 = vld [vmem:[#allocation2] sm:$0xff] }
   0xc   :  { %v31_v16 = vld [vmem:[%s183_s0] sm:$0xff] }
   0xd   :  { %55 = vmatpush.msra.mxu0 %v44_v3  ;;  %v94_v17 = vld [vmem:[%s185_s2] ss:$0 sm:$0xff] }
   0xf   :  { %56 = vmatpush.msra.mxu0 %v43_v4 }
  0x11   :  { %57 = vmatpush.msra.mxu0 %v42_v5 }
  0x13   :  { %58 = vmatpush.msra.mxu0 %v41_v6 }
  0x15   :  { %59 = vmatpush.msra.mxu0 %v40_v7 }
  0x17   :  { %60 = vmatpush.msra.mxu0 %v39_v8 }
  0x19   :  { %61 = vmatpush.msra.mxu0 %v38_v9 }
  0x1b   :  { %62 = vmatpush.msra.mxu0 %v37_v10 }
  0x1d   :  { %63 = vmatpush.msra.mxu0 %v36_v11 }
  0x1f   :  { %64 = vmatpush.msra.mxu0 %v35_v12 }
  0x21   :  { %65 = vmatpush.msra.mxu0 %v34_v13 }
  0x23   :  { %66 = vmatpush.msra.mxu0 %v33_v14 }
  0x25   :  { %67 = vmatpush.msra.mxu0 %v32_v15 }
  0x26   :  { %68 = vmatmul.f32.vlgmr.msra.gmra.mxu0 %v31_v16 }
  0xa3   :  { %v69_v18 = vpop.f32.mrf.mxu0 }
  0xa4   :  { %v70_v19 = vadd.f32 %v94_v17, %v69_v18 }
  0xa6   :  { %72 = vst [vmem:[#allocation5] sm:$0xff] %v70_v19 }
  0xa7   :  { %83 = dma.vmem_to_hbm [thread:$0]  %s79_s23, 128, %s81_s26, [#allocation4]  }
  0xa8   :  { %145 = dma.done.wait [#allocation4], 128  }
  0xa9   :  { %146 = vsyncadd [#allocation4], 4294967168 }
  0xaa   :  { %88 = vsyncpa [#allocation3], 1 }
  0xab   :  { %89 = vsyncpa [#allocation4], 1 }

</bundles_post_ra>
